<compile_context>
chip_gen: v7x
topology: tpu7x:2x2x1
jax: 0.10.0
libtpu: 0.0.40
codegen_flags: <defaults>
</compile_context>

<pallas_src>
import numpy as np
import jax
import jax.numpy as jnp
from jax import lax
from jax.experimental import pallas as pl
from jax.experimental.pallas import tpu as pltpu


def _round_up(x, m):
    return ((x + m - 1) // m) * m


def make_spp_kernel(grid_size, k_max, readout, gpb, m_pad, d_pad):
    """Build the Pallas kernel body for fixed grid / k_max / readout / block sizes."""
    row_w = 3 + k_max
    g2 = grid_size * grid_size

    def kernel(off_ref, xy_ref, feat_ref, out_ref, scratch_ref):
        # off_ref    : SMEM (B_pad + 1,)        int32  -- cumulative node offsets
        # xy_ref     : SMEM (N * row_w,)        int32  -- flattened xy table
        # feat_ref   : VMEM (gpb, m_pad, d_pad) f32    -- per-graph feature slabs
        # out_ref    : VMEM (gpb, g2, d_pad)    f32
        # scratch_ref: VMEM (g2, m_pad) f32 [mean: selection matrix]
        #              VMEM (g2, d_pad) f32 [max : pooled rows]

        # Hoisted iota (JAX does not CSE broadcasts inside loops).
        if readout == 'max':
            node_iota = lax.broadcasted_iota(jnp.int32, (m_pad, 1), 0)
        else:
            node_iota = lax.broadcasted_iota(jnp.int32, (1, m_pad), 1)

        for g in range(gpb):                        # static unroll over graphs in this block
            gg = pl.program_id(0) * gpb + g         # global graph index
            start = off_ref[gg]
            stop = off_ref[gg + 1]

            # Fresh per-graph state; cells never written stay zero (matches torch.zeros init).
            scratch_ref[...] = jnp.zeros_like(scratch_ref)

            feat_g = feat_ref[g, :, :] if readout == 'max' else None

            def row_body(idx, active):
                base = idx * row_w
                gx = xy_ref[base]
                # PyTorch `break`s on the first xy[idx, 0] == -1: once inactive, stay inactive.
                valid = jnp.logical_and(active, gx != -1)
                gy = xy_ref[base + 1]
                n_ent = xy_ref[base + 2]
                in_grid = jnp.logical_and(
                    jnp.logical_and(gx >= 0, gx < grid_size),
                    jnp.logical_and(gy >= 0, gy < grid_size))
                # Guard n_entries == 0 (PyTorch would give NaN / raise) and out-of-range
                # cells (would silently corrupt VMEM on TPU -- no runtime bounds check).
                write_ok = jnp.logical_and(valid,
                                           jnp.logical_and(in_grid, n_ent > 0))

                @pl.when(write_ok)
                def _():
                    cell = gx * grid_size + gy
                    if readout == 'max':
                        hits = jnp.zeros((m_pad, 1), dtype=jnp.bool_)
                        for k in range(k_max):
                            ind = xy_ref[base + 3 + k]
                            hits = jnp.logical_or(
                                hits, jnp.logical_and(node_iota == ind, k < n_ent))
                        pool = jnp.max(jnp.where(hits, feat_g, -jnp.inf),
                                       axis=0, keepdims=True)          # (1, d_pad)
                        scratch_ref[pl.ds(cell, 1), :] = pool
                    else:
                        # Weight row: multiplicity of each local node, pre-scaled by
                        # 1/n_entries (composes with the MXU matmul below).
                        w = jnp.zeros((1, m_pad), dtype=jnp.float32)
                        for k in range(k_max):
                            ind = xy_ref[base + 3 + k]
                            w = w + jnp.logical_and(node_iota == ind,
                                                    k < n_ent).astype(jnp.float32)
                        w = w * (1.0 / n_ent.astype(jnp.float32))
                        # Overwrite => last row targeting a cell wins (PyTorch assignment).
                        scratch_ref[pl.ds(cell, 1), :] = w

                return valid

            lax.fori_loop(start, stop, row_body, jnp.asarray(True))

            if readout == 'max':
                out_ref[g, :, :] = scratch_ref[...]
            else:
                # One MXU matmul per graph replaces the serial gather/mean chain.
                out_ref[g, :, :] = jnp.dot(scratch_ref[...], feat_ref[g, :, :],
                                           preferred_element_type=jnp.float32)

    return kernel


def spp_pooling(features, xy, nodes_per_graph, *, grid_size, readout='mean',
                graphs_per_program=8):
    """Pallas SppPooling forward.  Returns NCHW (B, D, grid, grid) like the PyTorch module."""
    assert readout in ('mean', 'max')
    nodes_per_graph = np.asarray(nodes_per_graph, dtype=np.int64)
    B = int(nodes_per_graph.shape[0])
    N, D = features.shape
    k_max = int(xy.shape[1]) - 3
    g2 = grid_size * grid_size

    # Padded sizes: lane-dense last dims; per-graph slab covers the largest graph.
    d_pad = _round_up(D, 128)
    m_pad = max(128, _round_up(int(nodes_per_graph.max()), 128))

    gpb = max(1, min(int(graphs_per_program), B))      # graphs per grid step
    b_pad = _round_up(B, gpb)

    # Cumulative node offsets; padded graphs get start == stop == N (no xy rows processed).
    offsets = np.zeros(B + 1, dtype=np.int32)
    offsets[1:] = np.cumsum(nodes_per_graph).astype(np.int32)
    off_pad = np.concatenate(
        [offsets, np.full(b_pad - B, N, dtype=np.int32)]).astype(np.int32)

    # Dense zero-padded per-graph feature slabs: (b_pad, m_pad, d_pad).
    # Row N of the padded feature matrix is an all-zero row used for padding slots.
    row_index = np.full((b_pad, m_pad), N, dtype=np.int32)
    for b in range(B):
        n_b = int(nodes_per_graph[b])
        row_index[b, :n_b] = offsets[b] + np.arange(n_b, dtype=np.int32)
    feat_pad = jnp.pad(jnp.asarray(features, jnp.float32),
                       ((0, 1), (0, d_pad - D)))
    feat_packed = feat_pad[jnp.asarray(row_index)]          # (b_pad, m_pad, d_pad)

    # Flatten xy to 1-D before scalar prefetch (2-D SMEM arrays pad to [*, 128] words).
    xy_flat = jnp.asarray(xy, jnp.int32).reshape(-1)

    kernel = make_spp_kernel(grid_size, k_max, readout, gpb, m_pad, d_pad)

    scratch_shape = (g2, d_pad) if readout == 'max' else (g2, m_pad)
    in_block = gpb * m_pad * d_pad * 4
    out_block = gpb * g2 * d_pad * 4
    est = 2 * (in_block + out_block) + scratch_shape[0] * scratch_shape[1] * 4 + (2 << 20)
    # Only raise the scoped VMEM limit when the working set actually needs it (v5e default 16 MiB).
    vmem_limit = int(min(est, 100 << 20)) if est > (16 << 20) else None

    out = pl.pallas_call(
        kernel,
        out_shape=jax.ShapeDtypeStruct((b_pad, g2, d_pad), jnp.float32),
        grid_spec=pltpu.PrefetchScalarGridSpec(
            num_scalar_prefetch=2,                           # node offsets, xy table -> SMEM
            grid=(b_pad // gpb,),
            in_specs=[
                pl.BlockSpec((gpb, m_pad, d_pad), lambda b, off, xyt: (b, 0, 0)),
            ],
            out_specs=pl.BlockSpec((gpb, g2, d_pad), lambda b, off, xyt: (b, 0, 0)),
            scratch_shapes=[pltpu.VMEM(scratch_shape, jnp.float32)],
        ),
        compiler_params=pltpu.CompilerParams(
            dimension_semantics=("parallel",),               # graphs are independent blocks
            vmem_limit_bytes=vmem_limit,
        ),
    )(jnp.asarray(off_pad), xy_flat, feat_packed)

    out = out[:B, :, :D].reshape(B, grid_size, grid_size, D)
    # TODO(synk): drop this NCHW permute if the consumer accepts NHWC -- it costs a full extra
    # HBM read+write pass in XLA and yields a lane-sparse (last dim = grid) layout downstream.
    return out.transpose(0, 3, 1, 2)


def spp_ref(features, xy, nodes_per_graph, grid_size, input_dim, readout='mean'):
    """Pure-numpy mirror of the PyTorch forward pass (reference)."""
    features = np.asarray(features)
    xy = np.asarray(xy)
    B = len(nodes_per_graph)
    out = np.zeros((B, grid_size, grid_size, input_dim), dtype=np.float32)
    start = 0
    for g in range(B):
        stop = start + nodes_per_graph[g]
        F = features[start:stop, :]
        for idx in range(start, stop):
            if xy[idx, 0] == -1:
                break
            n = int(xy[idx, 2])
            inds = xy[idx, 3:3 + n]
            if readout == 'max':
                pv = F[inds, :].max(0)
            else:
                pv = F[inds, :].mean(0)
            out[g, xy[idx, 0], xy[idx, 1], :] = pv
        start = stop
    return out.transpose(0, 3, 1, 2)


if __name__ == "__main__":
    # Small deterministic synthetic problem.
    GRID = 4          # spp grid
    D = 32            # input_dim
    K_MAX = 8         # max entries per pooling cell
    nodes_per_graph = [18, 14]
    valid_rows = [10, 8]          # rows of xy carrying a pooling cell, per graph
    B = len(nodes_per_graph)
    N = sum(nodes_per_graph)

    key = jax.random.PRNGKey(0)
    k_feat, k_cell, k_nent, k_idx = jax.random.split(key, 4)
    features = jax.random.normal(k_feat, (N, D), dtype=jnp.float32)

    cell_keys = jax.random.split(k_cell, B)
    nent_keys = jax.random.split(k_nent, B)
    idx_keys = jax.random.split(k_idx, B)

    # Build the xy table: default rows are terminators (-1); unused index slots are 0.
    xy_np = np.zeros((N, 3 + K_MAX), dtype=np.int32)
    xy_np[:, 0] = -1
    start = 0
    for g, (ng, rg) in enumerate(zip(nodes_per_graph, valid_rows)):
        cells = np.asarray(jax.random.permutation(cell_keys[g], GRID * GRID))[:rg]
        nents = np.asarray(jax.random.randint(nent_keys[g], (rg,), 1, K_MAX + 1))
        inds = np.asarray(jax.random.randint(idx_keys[g], (rg, K_MAX), 0, ng))
        for i in range(rg):
            r = start + i
            xy_np[r, 0] = cells[i] // GRID
            xy_np[r, 1] = cells[i] % GRID
            xy_np[r, 2] = nents[i]
            xy_np[r, 3:] = 0
            xy_np[r, 3:3 + nents[i]] = inds[i, :nents[i]]
        start += ng

    for readout in ("mean", "max"):
        out = spp_pooling(
            features,
            jnp.asarray(xy_np),
            nodes_per_graph,
            grid_size=GRID,
            readout=readout,
        )
        out = jax.block_until_ready(out)
        ref = spp_ref(np.asarray(features), xy_np, nodes_per_graph, GRID, D,
                      readout=readout)
        np.testing.assert_allclose(np.asarray(out), ref, rtol=1e-5, atol=1e-5)

    print("KERNEL_OK")
</pallas_src>

<mosaic_0001>
module attributes {stable_mosaic.version = 11 : i64} {
  func.func @kernel(%arg0: i32, %arg1: memref<3xi32, #tpu.memory_space<smem>>, %arg2: memref<352xi32, #tpu.memory_space<smem>>, %arg3: memref<2x128x128xf32, #tpu.memory_space<vmem>>, %arg4: memref<2x16x128xf32, #tpu.memory_space<vmem>>, %arg5: memref<16x128xf32, #tpu.memory_space<vmem>>) attributes {dimension_semantics = [#tpu.dimension_semantics<parallel>], iteration_bounds = array<i64: 1>, scalar_prefetch = 2 : i64, scratch_operands = 1 : i64, tpu.core_type = #tpu.core_type<tc>, window_params = [{transform_indices = @transform_0, window_bounds = array<i64: 2, 128, 128>}, {transform_indices = @transform_1, window_bounds = array<i64: 2, 16, 128>}]} {
    %0 = tpu.iota {dimensions = array<i32: 1>} : vector<1x128xi32>
    %c2_i32 = arith.constant 2 : i32
    %1 = arith.muli %arg0, %c2_i32 : i32
    %c0_i32 = arith.constant 0 : i32
    %2 = arith.addi %1, %c0_i32 : i32
    %3 = arith.index_cast %2 : i32 to index
    %4 = memref.load %arg1[%3] : memref<3xi32, #tpu.memory_space<smem>>
    %c1_i32 = arith.constant 1 : i32
    %5 = arith.addi %2, %c1_i32 : i32
    %6 = arith.index_cast %5 : i32 to index
    %7 = memref.load %arg1[%6] : memref<3xi32, #tpu.memory_space<smem>>
    %cst = arith.constant 0.000000e+00 : f32
    %8 = vector.broadcast %cst : f32 to vector<16x128xf32>
    %c0 = arith.constant 0 : index
    %c0_0 = arith.constant 0 : index
    %9 = vector.load %arg5[%c0, %c0_0] : memref<16x128xf32, #tpu.memory_space<vmem>>, vector<16x128xf32>
    tpu.vector_store %arg5[%c0, %c0_0], %8 {strides = array<i32>} : memref<16x128xf32, #tpu.memory_space<vmem>>, vector<16x128xf32>,
    %true = arith.constant true
    %10 = arith.subi %7, %4 : i32
    %11 = arith.addi %4, %10 : i32
    %c1_i32_1 = arith.constant 1 : i32
    %12 = scf.for %arg6 = %4 to %11 step %c1_i32_1 iter_args(%arg7 = %true) -> (i1)  : i32 {
      %c11_i32 = arith.constant 11 : i32
      %39 = arith.muli %arg6, %c11_i32 : i32
      %40 = arith.index_cast %39 : i32 to index
      %41 = memref.load %arg2[%40] : memref<352xi32, #tpu.memory_space<smem>>
      %c-1_i32 = arith.constant -1 : i32
      %42 = arith.cmpi ne, %41, %c-1_i32 : i32
      %43 = arith.andi %arg7, %42 : i1
      %c1_i32_27 = arith.constant 1 : i32
      %44 = arith.addi %39, %c1_i32_27 : i32
      %45 = arith.index_cast %44 : i32 to index
      %46 = memref.load %arg2[%45] : memref<352xi32, #tpu.memory_space<smem>>
      %c2_i32_28 = arith.constant 2 : i32
      %47 = arith.addi %39, %c2_i32_28 : i32
      %48 = arith.index_cast %47 : i32 to index
      %49 = memref.load %arg2[%48] : memref<352xi32, #tpu.memory_space<smem>>
      %c0_i32_29 = arith.constant 0 : i32
      %50 = arith.cmpi sge, %41, %c0_i32_29 : i32
      %c4_i32 = arith.constant 4 : i32
      %51 = arith.cmpi slt, %41, %c4_i32 : i32
      %52 = arith.andi %50, %51 : i1
      %c0_i32_30 = arith.constant 0 : i32
      %53 = arith.cmpi sge, %46, %c0_i32_30 : i32
      %c4_i32_31 = arith.constant 4 : i32
      %54 = arith.cmpi slt, %46, %c4_i32_31 : i32
      %55 = arith.andi %53, %54 : i1
      %56 = arith.andi %52, %55 : i1
      %c0_i32_32 = arith.constant 0 : i32
      %57 = arith.cmpi sgt, %49, %c0_i32_32 : i32
      %58 = arith.andi %56, %57 : i1
      %59 = arith.andi %43, %58 : i1
      %60 = arith.extui %59 : i1 to i32
      %c0_i32_33 = arith.constant 0 : i32
      %61 = arith.cmpi ne, %60, %c0_i32_33 : i32
      scf.if %61 {
        %c4_i32_34 = arith.constant 4 : i32
        %62 = arith.muli %41, %c4_i32_34 : i32
        %63 = arith.addi %62, %46 : i32
        %cst_35 = arith.constant 0.000000e+00 : f32
        %64 = vector.broadcast %cst_35 : f32 to vector<1x128xf32>
        %c3_i32 = arith.constant 3 : i32
        %65 = arith.addi %39, %c3_i32 : i32
        %c0_i32_36 = arith.constant 0 : i32
        %66 = arith.addi %65, %c0_i32_36 : i32
        %67 = arith.index_cast %66 : i32 to index
        %68 = memref.load %arg2[%67] : memref<352xi32, #tpu.memory_space<smem>>
        %69 = vector.broadcast %68 : i32 to vector<1x128xi32>
        %70 = arith.cmpi eq, %0, %69 : vector<1x128xi32>
        %c0_i32_37 = arith.constant 0 : i32
        %71 = arith.cmpi sgt, %49, %c0_i32_37 : i32
        %72 = vector.broadcast %71 : i1 to vector<1x128xi1>
        %73 = arith.andi %70, %72 : vector<1x128xi1>
        %74 = arith.extui %73 : vector<1x128xi1> to vector<1x128xi32>
        %75 = arith.sitofp %74 : vector<1x128xi32> to vector<1x128xf32>
        %76 = arith.addf %64, %75 : vector<1x128xf32>
        %c3_i32_38 = arith.constant 3 : i32
        %77 = arith.addi %39, %c3_i32_38 : i32
        %c1_i32_39 = arith.constant 1 : i32
        %78 = arith.addi %77, %c1_i32_39 : i32
        %79 = arith.index_cast %78 : i32 to index
        %80 = memref.load %arg2[%79] : memref<352xi32, #tpu.memory_space<smem>>
        %81 = vector.broadcast %80 : i32 to vector<1x128xi32>
        %82 = arith.cmpi eq, %0, %81 : vector<1x128xi32>
        %c1_i32_40 = arith.constant 1 : i32
        %83 = arith.cmpi sgt, %49, %c1_i32_40 : i32
        %84 = vector.broadcast %83 : i1 to vector<1x128xi1>
        %85 = arith.andi %82, %84 : vector<1x128xi1>
        %86 = arith.extui %85 : vector<1x128xi1> to vector<1x128xi32>
        %87 = arith.sitofp %86 : vector<1x128xi32> to vector<1x128xf32>
        %88 = arith.addf %76, %87 : vector<1x128xf32>
        %c3_i32_41 = arith.constant 3 : i32
        %89 = arith.addi %39, %c3_i32_41 : i32
        %c2_i32_42 = arith.constant 2 : i32
        %90 = arith.addi %89, %c2_i32_42 : i32
        %91 = arith.index_cast %90 : i32 to index
        %92 = memref.load %arg2[%91] : memref<352xi32, #tpu.memory_space<smem>>
        %93 = vector.broadcast %92 : i32 to vector<1x128xi32>
        %94 = arith.cmpi eq, %0, %93 : vector<1x128xi32>
        %c2_i32_43 = arith.constant 2 : i32
        %95 = arith.cmpi sgt, %49, %c2_i32_43 : i32
        %96 = vector.broadcast %95 : i1 to vector<1x128xi1>
        %97 = arith.andi %94, %96 : vector<1x128xi1>
        %98 = arith.extui %97 : vector<1x128xi1> to vector<1x128xi32>
        %99 = arith.sitofp %98 : vector<1x128xi32> to vector<1x128xf32>
        %100 = arith.addf %88, %99 : vector<1x128xf32>
        %c3_i32_44 = arith.constant 3 : i32
        %101 = arith.addi %39, %c3_i32_44 : i32
        %c3_i32_45 = arith.constant 3 : i32
        %102 = arith.addi %101, %c3_i32_45 : i32
        %103 = arith.index_cast %102 : i32 to index
        %104 = memref.load %arg2[%103] : memref<352xi32, #tpu.memory_space<smem>>
        %105 = vector.broadcast %104 : i32 to vector<1x128xi32>
        %106 = arith.cmpi eq, %0, %105 : vector<1x128xi32>
        %c3_i32_46 = arith.constant 3 : i32
        %107 = arith.cmpi sgt, %49, %c3_i32_46 : i32
        %108 = vector.broadcast %107 : i1 to vector<1x128xi1>
        %109 = arith.andi %106, %108 : vector<1x128xi1>
        %110 = arith.extui %109 : vector<1x128xi1> to vector<1x128xi32>
        %111 = arith.sitofp %110 : vector<1x128xi32> to vector<1x128xf32>
        %112 = arith.addf %100, %111 : vector<1x128xf32>
        %c3_i32_47 = arith.constant 3 : i32
        %113 = arith.addi %39, %c3_i32_47 : i32
        %c4_i32_48 = arith.constant 4 : i32
        %114 = arith.addi %113, %c4_i32_48 : i32
        %115 = arith.index_cast %114 : i32 to index
        %116 = memref.load %arg2[%115] : memref<352xi32, #tpu.memory_space<smem>>
        %117 = vector.broadcast %116 : i32 to vector<1x128xi32>
        %118 = arith.cmpi eq, %0, %117 : vector<1x128xi32>
        %c4_i32_49 = arith.constant 4 : i32
        %119 = arith.cmpi sgt, %49, %c4_i32_49 : i32
        %120 = vector.broadcast %119 : i1 to vector<1x128xi1>
        %121 = arith.andi %118, %120 : vector<1x128xi1>
        %122 = arith.extui %121 : vector<1x128xi1> to vector<1x128xi32>
        %123 = arith.sitofp %122 : vector<1x128xi32> to vector<1x128xf32>
        %124 = arith.addf %112, %123 : vector<1x128xf32>
        %c3_i32_50 = arith.constant 3 : i32
        %125 = arith.addi %39, %c3_i32_50 : i32
        %c5_i32 = arith.constant 5 : i32
        %126 = arith.addi %125, %c5_i32 : i32
        %127 = arith.index_cast %126 : i32 to index
        %128 = memref.load %arg2[%127] : memref<352xi32, #tpu.memory_space<smem>>
        %129 = vector.broadcast %128 : i32 to vector<1x128xi32>
        %130 = arith.cmpi eq, %0, %129 : vector<1x128xi32>
        %c5_i32_51 = arith.constant 5 : i32
        %131 = arith.cmpi sgt, %49, %c5_i32_51 : i32
        %132 = vector.broadcast %131 : i1 to vector<1x128xi1>
        %133 = arith.andi %130, %132 : vector<1x128xi1>
        %134 = arith.extui %133 : vector<1x128xi1> to vector<1x128xi32>
        %135 = arith.sitofp %134 : vector<1x128xi32> to vector<1x128xf32>
        %136 = arith.addf %124, %135 : vector<1x128xf32>
        %c3_i32_52 = arith.constant 3 : i32
        %137 = arith.addi %39, %c3_i32_52 : i32
        %c6_i32 = arith.constant 6 : i32
        %138 = arith.addi %137, %c6_i32 : i32
        %139 = arith.index_cast %138 : i32 to index
        %140 = memref.load %arg2[%139] : memref<352xi32, #tpu.memory_space<smem>>
        %141 = vector.broadcast %140 : i32 to vector<1x128xi32>
        %142 = arith.cmpi eq, %0, %141 : vector<1x128xi32>
        %c6_i32_53 = arith.constant 6 : i32
        %143 = arith.cmpi sgt, %49, %c6_i32_53 : i32
        %144 = vector.broadcast %143 : i1 to vector<1x128xi1>
        %145 = arith.andi %142, %144 : vector<1x128xi1>
        %146 = arith.extui %145 : vector<1x128xi1> to vector<1x128xi32>
        %147 = arith.sitofp %146 : vector<1x128xi32> to vector<1x128xf32>
        %148 = arith.addf %136, %147 : vector<1x128xf32>
        %c3_i32_54 = arith.constant 3 : i32
        %149 = arith.addi %39, %c3_i32_54 : i32
        %c7_i32 = arith.constant 7 : i32
        %150 = arith.addi %149, %c7_i32 : i32
        %151 = arith.index_cast %150 : i32 to index
        %152 = memref.load %arg2[%151] : memref<352xi32, #tpu.memory_space<smem>>
        %153 = vector.broadcast %152 : i32 to vector<1x128xi32>
        %154 = arith.cmpi eq, %0, %153 : vector<1x128xi32>
        %c7_i32_55 = arith.constant 7 : i32
        %155 = arith.cmpi sgt, %49, %c7_i32_55 : i32
        %156 = vector.broadcast %155 : i1 to vector<1x128xi1>
        %157 = arith.andi %154, %156 : vector<1x128xi1>
        %158 = arith.extui %157 : vector<1x128xi1> to vector<1x128xi32>
        %159 = arith.sitofp %158 : vector<1x128xi32> to vector<1x128xf32>
        %160 = arith.addf %148, %159 : vector<1x128xf32>
        %161 = arith.sitofp %49 : i32 to f32
        %cst_56 = arith.constant 1.000000e+00 : f32
        %162 = arith.divf %cst_56, %161 : f32
        %163 = vector.broadcast %162 : f32 to vector<1x128xf32>
        %164 = arith.mulf %160, %163 : vector<1x128xf32>
        %165 = arith.index_cast %63 : i32 to index
        %c0_57 = arith.constant 0 : index
        %166 = vector.load %arg5[%165, %c0_57] : memref<16x128xf32, #tpu.memory_space<vmem>>, vector<1x128xf32>
        tpu.vector_store %arg5[%165, %c0_57], %164 {strides = array<i32>} : memref<16x128xf32, #tpu.memory_space<vmem>>, vector<1x128xf32>,
      } else {
      }
      scf.yield %43 : i1
    }
    %c0_2 = arith.constant 0 : index
    %c0_3 = arith.constant 0 : index
    %13 = vector.load %arg5[%c0_2, %c0_3] : memref<16x128xf32, #tpu.memory_space<vmem>>, vector<16x128xf32>
    %c0_4 = arith.constant 0 : index
    %c0_5 = arith.constant 0 : index
    %c0_6 = arith.constant 0 : index
    %14 = vector.load %arg3[%c0_4, %c0_5, %c0_6] : memref<2x128x128xf32, #tpu.memory_space<vmem>>, vector<1x128x128xf32>
    %15 = vector.shape_cast %14 : vector<1x128x128xf32> to vector<128x128xf32>
    %cst_7 = arith.constant dense<0.000000e+00> : vector<16x128xf32>
    %16 = tpu.matmul %13, %15, %cst_7 {dimension_numbers = #tpu.dot_dimension_numbers<[1], [0], [0], [1], [0, 0, 1, 1], [], []>} : vector<16x128xf32>, vector<128x128xf32>, vector<16x128xf32> -> vector<16x128xf32>
    %c0_8 = arith.constant 0 : index
    %c0_9 = arith.constant 0 : index
    %c0_10 = arith.constant 0 : index
    %17 = vector.load %arg4[%c0_8, %c0_9, %c0_10] : memref<2x16x128xf32, #tpu.memory_space<vmem>>, vector<1x16x128xf32>
    %18 = vector.shape_cast %17 : vector<1x16x128xf32> to vector<16x128xf32>
    %19 = vector.shape_cast %16 : vector<16x128xf32> to vector<1x16x128xf32>
    tpu.vector_store %arg4[%c0_8, %c0_9, %c0_10], %19 {strides = array<i32>} : memref<2x16x128xf32, #tpu.memory_space<vmem>>, vector<1x16x128xf32>,
    %c2_i32_11 = arith.constant 2 : i32
    %20 = arith.muli %arg0, %c2_i32_11 : i32
    %c1_i32_12 = arith.constant 1 : i32
    %21 = arith.addi %20, %c1_i32_12 : i32
    %22 = arith.index_cast %21 : i32 to index
    %23 = memref.load %arg1[%22] : memref<3xi32, #tpu.memory_space<smem>>
    %c1_i32_13 = arith.constant 1 : i32
    %24 = arith.addi %21, %c1_i32_13 : i32
    %25 = arith.index_cast %24 : i32 to index
    %26 = memref.load %arg1[%25] : memref<3xi32, #tpu.memory_space<smem>>
    %cst_14 = arith.constant 0.000000e+00 : f32
    %27 = vector.broadcast %cst_14 : f32 to vector<16x128xf32>
    %c0_15 = arith.constant 0 : index
    %c0_16 = arith.constant 0 : index
    %28 = vector.load %arg5[%c0_15, %c0_16] : memref<16x128xf32, #tpu.memory_space<vmem>>, vector<16x128xf32>
    tpu.vector_store %arg5[%c0_15, %c0_16], %27 {strides = array<i32>} : memref<16x128xf32, #tpu.memory_space<vmem>>, vector<16x128xf32>,
    %true_17 = arith.constant true
    %29 = arith.subi %26, %23 : i32
    %30 = arith.addi %23, %29 : i32
    %c1_i32_18 = arith.constant 1 : i32
    %31 = scf.for %arg6 = %23 to %30 step %c1_i32_18 iter_args(%arg7 = %true_17) -> (i1)  : i32 {
      %c11_i32 = arith.constant 11 : i32
      %39 = arith.muli %arg6, %c11_i32 : i32
      %40 = arith.index_cast %39 : i32 to index
      %41 = memref.load %arg2[%40] : memref<352xi32, #tpu.memory_space<smem>>
      %c-1_i32 = arith.constant -1 : i32
      %42 = arith.cmpi ne, %41, %c-1_i32 : i32
      %43 = arith.andi %arg7, %42 : i1
      %c1_i32_27 = arith.constant 1 : i32
      %44 = arith.addi %39, %c1_i32_27 : i32
      %45 = arith.index_cast %44 : i32 to index
      %46 = memref.load %arg2[%45] : memref<352xi32, #tpu.memory_space<smem>>
      %c2_i32_28 = arith.constant 2 : i32
      %47 = arith.addi %39, %c2_i32_28 : i32
      %48 = arith.index_cast %47 : i32 to index
      %49 = memref.load %arg2[%48] : memref<352xi32, #tpu.memory_space<smem>>
      %c0_i32_29 = arith.constant 0 : i32
      %50 = arith.cmpi sge, %41, %c0_i32_29 : i32
      %c4_i32 = arith.constant 4 : i32
      %51 = arith.cmpi slt, %41, %c4_i32 : i32
      %52 = arith.andi %50, %51 : i1
      %c0_i32_30 = arith.constant 0 : i32
      %53 = arith.cmpi sge, %46, %c0_i32_30 : i32
      %c4_i32_31 = arith.constant 4 : i32
      %54 = arith.cmpi slt, %46, %c4_i32_31 : i32
      %55 = arith.andi %53, %54 : i1
      %56 = arith.andi %52, %55 : i1
      %c0_i32_32 = arith.constant 0 : i32
      %57 = arith.cmpi sgt, %49, %c0_i32_32 : i32
      %58 = arith.andi %56, %57 : i1
      %59 = arith.andi %43, %58 : i1
      %60 = arith.extui %59 : i1 to i32
      %c0_i32_33 = arith.constant 0 : i32
      %61 = arith.cmpi ne, %60, %c0_i32_33 : i32
      scf.if %61 {
        %c4_i32_34 = arith.constant 4 : i32
        %62 = arith.muli %41, %c4_i32_34 : i32
        %63 = arith.addi %62, %46 : i32
        %cst_35 = arith.constant 0.000000e+00 : f32
        %64 = vector.broadcast %cst_35 : f32 to vector<1x128xf32>
        %c3_i32 = arith.constant 3 : i32
        %65 = arith.addi %39, %c3_i32 : i32
        %c0_i32_36 = arith.constant 0 : i32
        %66 = arith.addi %65, %c0_i32_36 : i32
        %67 = arith.index_cast %66 : i32 to index
        %68 = memref.load %arg2[%67] : memref<352xi32, #tpu.memory_space<smem>>
        %69 = vector.broadcast %68 : i32 to vector<1x128xi32>
        %70 = arith.cmpi eq, %0, %69 : vector<1x128xi32>
        %c0_i32_37 = arith.constant 0 : i32
        %71 = arith.cmpi sgt, %49, %c0_i32_37 : i32
        %72 = vector.broadcast %71 : i1 to vector<1x128xi1>
        %73 = arith.andi %70, %72 : vector<1x128xi1>
        %74 = arith.extui %73 : vector<1x128xi1> to vector<1x128xi32>
        %75 = arith.sitofp %74 : vector<1x128xi32> to vector<1x128xf32>
        %76 = arith.addf %64, %75 : vector<1x128xf32>
        %c3_i32_38 = arith.constant 3 : i32
        %77 = arith.addi %39, %c3_i32_38 : i32
        %c1_i32_39 = arith.constant 1 : i32
        %78 = arith.addi %77, %c1_i32_39 : i32
        %79 = arith.index_cast %78 : i32 to index
        %80 = memref.load %arg2[%79] : memref<352xi32, #tpu.memory_space<smem>>
        %81 = vector.broadcast %80 : i32 to vector<1x128xi32>
        %82 = arith.cmpi eq, %0, %81 : vector<1x128xi32>
        %c1_i32_40 = arith.constant 1 : i32
        %83 = arith.cmpi sgt, %49, %c1_i32_40 : i32
        %84 = vector.broadcast %83 : i1 to vector<1x128xi1>
        %85 = arith.andi %82, %84 : vector<1x128xi1>
        %86 = arith.extui %85 : vector<1x128xi1> to vector<1x128xi32>
        %87 = arith.sitofp %86 : vector<1x128xi32> to vector<1x128xf32>
        %88 = arith.addf %76, %87 : vector<1x128xf32>
        %c3_i32_41 = arith.constant 3 : i32
        %89 = arith.addi %39, %c3_i32_41 : i32
        %c2_i32_42 = arith.constant 2 : i32
        %90 = arith.addi %89, %c2_i32_42 : i32
        %91 = arith.index_cast %90 : i32 to index
        %92 = memref.load %arg2[%91] : memref<352xi32, #tpu.memory_space<smem>>
        %93 = vector.broadcast %92 : i32 to vector<1x128xi32>
        %94 = arith.cmpi eq, %0, %93 : vector<1x128xi32>
        %c2_i32_43 = arith.constant 2 : i32
        %95 = arith.cmpi sgt, %49, %c2_i32_43 : i32
        %96 = vector.broadcast %95 : i1 to vector<1x128xi1>
        %97 = arith.andi %94, %96 : vector<1x128xi1>
        %98 = arith.extui %97 : vector<1x128xi1> to vector<1x128xi32>
        %99 = arith.sitofp %98 : vector<1x128xi32> to vector<1x128xf32>
        %100 = arith.addf %88, %99 : vector<1x128xf32>
        %c3_i32_44 = arith.constant 3 : i32
        %101 = arith.addi %39, %c3_i32_44 : i32
        %c3_i32_45 = arith.constant 3 : i32
        %102 = arith.addi %101, %c3_i32_45 : i32
        %103 = arith.index_cast %102 : i32 to index
        %104 = memref.load %arg2[%103] : memref<352xi32, #tpu.memory_space<smem>>
        %105 = vector.broadcast %104 : i32 to vector<1x128xi32>
        %106 = arith.cmpi eq, %0, %105 : vector<1x128xi32>
        %c3_i32_46 = arith.constant 3 : i32
        %107 = arith.cmpi sgt, %49, %c3_i32_46 : i32
        %108 = vector.broadcast %107 : i1 to vector<1x128xi1>
        %109 = arith.andi %106, %108 : vector<1x128xi1>
        %110 = arith.extui %109 : vector<1x128xi1> to vector<1x128xi32>
        %111 = arith.sitofp %110 : vector<1x128xi32> to vector<1x128xf32>
        %112 = arith.addf %100, %111 : vector<1x128xf32>
        %c3_i32_47 = arith.constant 3 : i32
        %113 = arith.addi %39, %c3_i32_47 : i32
        %c4_i32_48 = arith.constant 4 : i32
        %114 = arith.addi %113, %c4_i32_48 : i32
        %115 = arith.index_cast %114 : i32 to index
        %116 = memref.load %arg2[%115] : memref<352xi32, #tpu.memory_space<smem>>
        %117 = vector.broadcast %116 : i32 to vector<1x128xi32>
        %118 = arith.cmpi eq, %0, %117 : vector<1x128xi32>
        %c4_i32_49 = arith.constant 4 : i32
        %119 = arith.cmpi sgt, %49, %c4_i32_49 : i32
        %120 = vector.broadcast %119 : i1 to vector<1x128xi1>
        %121 = arith.andi %118, %120 : vector<1x128xi1>
        %122 = arith.extui %121 : vector<1x128xi1> to vector<1x128xi32>
        %123 = arith.sitofp %122 : vector<1x128xi32> to vector<1x128xf32>
        %124 = arith.addf %112, %123 : vector<1x128xf32>
        %c3_i32_50 = arith.constant 3 : i32
        %125 = arith.addi %39, %c3_i32_50 : i32
        %c5_i32 = arith.constant 5 : i32
        %126 = arith.addi %125, %c5_i32 : i32
        %127 = arith.index_cast %126 : i32 to index
        %128 = memref.load %arg2[%127] : memref<352xi32, #tpu.memory_space<smem>>
        %129 = vector.broadcast %128 : i32 to vector<1x128xi32>
        %130 = arith.cmpi eq, %0, %129 : vector<1x128xi32>
        %c5_i32_51 = arith.constant 5 : i32
        %131 = arith.cmpi sgt, %49, %c5_i32_51 : i32
        %132 = vector.broadcast %131 : i1 to vector<1x128xi1>
        %133 = arith.andi %130, %132 : vector<1x128xi1>
        %134 = arith.extui %133 : vector<1x128xi1> to vector<1x128xi32>
        %135 = arith.sitofp %134 : vector<1x128xi32> to vector<1x128xf32>
        %136 = arith.addf %124, %135 : vector<1x128xf32>
        %c3_i32_52 = arith.constant 3 : i32
        %137 = arith.addi %39, %c3_i32_52 : i32
        %c6_i32 = arith.constant 6 : i32
        %138 = arith.addi %137, %c6_i32 : i32
        %139 = arith.index_cast %138 : i32 to index
        %140 = memref.load %arg2[%139] : memref<352xi32, #tpu.memory_space<smem>>
        %141 = vector.broadcast %140 : i32 to vector<1x128xi32>
        %142 = arith.cmpi eq, %0, %141 : vector<1x128xi32>
        %c6_i32_53 = arith.constant 6 : i32
        %143 = arith.cmpi sgt, %49, %c6_i32_53 : i32
        %144 = vector.broadcast %143 : i1 to vector<1x128xi1>
        %145 = arith.andi %142, %144 : vector<1x128xi1>
        %146 = arith.extui %145 : vector<1x128xi1> to vector<1x128xi32>
        %147 = arith.sitofp %146 : vector<1x128xi32> to vector<1x128xf32>
        %148 = arith.addf %136, %147 : vector<1x128xf32>
        %c3_i32_54 = arith.constant 3 : i32
        %149 = arith.addi %39, %c3_i32_54 : i32
        %c7_i32 = arith.constant 7 : i32
        %150 = arith.addi %149, %c7_i32 : i32
        %151 = arith.index_cast %150 : i32 to index
        %152 = memref.load %arg2[%151] : memref<352xi32, #tpu.memory_space<smem>>
        %153 = vector.broadcast %152 : i32 to vector<1x128xi32>
        %154 = arith.cmpi eq, %0, %153 : vector<1x128xi32>
        %c7_i32_55 = arith.constant 7 : i32
        %155 = arith.cmpi sgt, %49, %c7_i32_55 : i32
        %156 = vector.broadcast %155 : i1 to vector<1x128xi1>
        %157 = arith.andi %154, %156 : vector<1x128xi1>
        %158 = arith.extui %157 : vector<1x128xi1> to vector<1x128xi32>
        %159 = arith.sitofp %158 : vector<1x128xi32> to vector<1x128xf32>
        %160 = arith.addf %148, %159 : vector<1x128xf32>
        %161 = arith.sitofp %49 : i32 to f32
        %cst_56 = arith.constant 1.000000e+00 : f32
        %162 = arith.divf %cst_56, %161 : f32
        %163 = vector.broadcast %162 : f32 to vector<1x128xf32>
        %164 = arith.mulf %160, %163 : vector<1x128xf32>
        %165 = arith.index_cast %63 : i32 to index
        %c0_57 = arith.constant 0 : index
        %166 = vector.load %arg5[%165, %c0_57] : memref<16x128xf32, #tpu.memory_space<vmem>>, vector<1x128xf32>
        tpu.vector_store %arg5[%165, %c0_57], %164 {strides = array<i32>} : memref<16x128xf32, #tpu.memory_space<vmem>>, vector<1x128xf32>,
      } else {
      }
      scf.yield %43 : i1
    }
    %c0_19 = arith.constant 0 : index
    %c0_20 = arith.constant 0 : index
    %32 = vector.load %arg5[%c0_19, %c0_20] : memref<16x128xf32, #tpu.memory_space<vmem>>, vector<16x128xf32>
    %c1 = arith.constant 1 : index
    %c0_21 = arith.constant 0 : index
    %c0_22 = arith.constant 0 : index
    %33 = vector.load %arg3[%c1, %c0_21, %c0_22] : memref<2x128x128xf32, #tpu.memory_space<vmem>>, vector<1x128x128xf32>
    %34 = vector.shape_cast %33 : vector<1x128x128xf32> to vector<128x128xf32>
    %cst_23 = arith.constant dense<0.000000e+00> : vector<16x128xf32>
    %35 = tpu.matmul %32, %34, %cst_23 {dimension_numbers = #tpu.dot_dimension_numbers<[1], [0], [0], [1], [0, 0, 1, 1], [], []>} : vector<16x128xf32>, vector<128x128xf32>, vector<16x128xf32> -> vector<16x128xf32>
    %c1_24 = arith.constant 1 : index
    %c0_25 = arith.constant 0 : index
    %c0_26 = arith.constant 0 : index
    %36 = vector.load %arg4[%c1_24, %c0_25, %c0_26] : memref<2x16x128xf32, #tpu.memory_space<vmem>>, vector<1x16x128xf32>
    %37 = vector.shape_cast %36 : vector<1x16x128xf32> to vector<16x128xf32>
    %38 = vector.shape_cast %35 : vector<16x128xf32> to vector<1x16x128xf32>
    tpu.vector_store %arg4[%c1_24, %c0_25, %c0_26], %38 {strides = array<i32>} : memref<2x16x128xf32, #tpu.memory_space<vmem>>, vector<1x16x128xf32>,
    return
  }
  func.func @transform_0(%arg0: i32, %arg1: memref<3xi32, #tpu.memory_space<smem>>, %arg2: memref<352xi32, #tpu.memory_space<smem>>) -> (i32, i32, i32) {
    %c0_i32 = arith.constant 0 : i32
    %c0_i32_0 = arith.constant 0 : i32
    %c0_i32_1 = arith.constant 0 : i32
    return %arg0, %c0_i32, %c0_i32_0 : i32, i32, i32
  }
  func.func @transform_1(%arg0: i32, %arg1: memref<3xi32, #tpu.memory_space<smem>>, %arg2: memref<352xi32, #tpu.memory_space<smem>>) -> (i32, i32, i32) {
    %c0_i32 = arith.constant 0 : i32
    %c0_i32_0 = arith.constant 0 : i32
    %c0_i32_1 = arith.constant 0 : i32
    return %arg0, %c0_i32, %c0_i32_0 : i32, i32, i32
  }
}

</mosaic_0001>

<bundles_post_ra>
// kernel: tpu_custom_call.1
= control target key start
LH: loop header
LB: loop body
LE: loop exit
PB: predicated region body
PF: predicated region fallthrough
CT: control target
= control target key end

     0   :  { %s1283_s0 = inlined_call_operand.hbm [shape: s32[3], index: 0, kind: input, shape index: {}]   ;;  %s1284_s2 = inlined_call_operand.hbm [shape: f32[2,128,128], index: 2, kind: input, shape index: {}]   ;;  %s1285_s3 = inlined_call_operand.hbm [shape: f32[2,16,128], index: 3, kind: output, shape index: {}]   ;;  %s1286_s1 = inlined_call_operand.hbm [shape: s32[352], index: 1, kind: input, shape index: {}]  }
   0x1   :  { %s791_s14 = scalar_lea.hbm %s1283_s0, 16 }
   0x2   :  { %p792_p0 = scmp.ne.s32.totalorder %s1283_s0, %s791_s14  ;;  %p795_p1 = scmp.lt.u32.totalorder %s791_s14, %s1283_s0 }
   0x4   :  { %p797_p2 = pnand %p795_p1, %p792_p0 }
   0x6   :  { %800 = shalt.err (!%p797_p2)  }
   0x7   :  { %s893_s19 = smov [#allocation4]   ;;  %s801_s24 = scalar_lea.hbm %s1286_s1, 48 }
   0x8   :  { %9 = dma.hbm_to_smem %s1283_s0, 16, %s893_s19, [#allocation3] }
   0x9   :  { %p802_p3 = scmp.ne.s32.totalorder %s1286_s1, %s801_s24  ;;  %s803_s29 = scalar_lea.hbm %s1286_s1, 64 }
   0xa   :  { %p804_p4 = scmp.lt.u32.totalorder %s803_s29, %s801_s24  ;;  %p805_p5 = scmp.lt.u32.totalorder %s801_s24, %s1286_s1 }
   0xc   :  { %p806_p6 = por %p805_p5, %p804_p4 }
   0xe   :  { %p807_p7 = pnand %p806_p6, %p802_p3 }
  0x10   :  { %810 = shalt.err (!%p807_p7)  }
  0x11   :  { %s894_s0 = smov [#allocation5]  }
  0x12   :  { %11 = dma.hbm_to_smem %s1286_s1, 48, %s894_s0, [#allocation3] }
  0x13   :  { %871 = dma.done.wait [#allocation3], 64 }
  0x14   :  { %872 = vsyncadd [#allocation3], 4294967232 }
  0x15   :  { %13 = sfence }
  0x16   :  { %14 = vsyncpa [#allocation7], 0 }
  0x17   :  { %15 = vsyncpa [#allocation8], 0  ;;  %s895_s7 = smov [#allocation6]   ;;  %s811_s11 = scalar_lea.hbm %s1284_s2, 4096 }
  0x18   :  { %s21_s8 = sshll.u32 %s895_s7, 4  ;;  %p812_p8 = scmp.ne.s32.totalorder %s1284_s2, %s811_s11  ;;  %s22_s8 = int_to_ptr.vmem [resolvable:$true] %s21_s8 }
  0x19   :  { %p815_p9 = scmp.lt.u32.totalorder %s811_s11, %s1284_s2 }
  0x1b   :  { %p817_p10 = pnand %p815_p9, %p812_p8 }
  0x1d   :  { %820 = shalt.err (!%p817_p10)
}
  0x1e   :  { %s821_s1 = scalar_lea.vmem %s22_s8, 4096  ;;  %p826_p12 = scmp.lt.s32.totalorder %s22_s8, %s22_s8 }
  0x1f   :  { %p822_p11 = scmp.ne.s32.totalorder %s22_s8, %s821_s1  ;;  %p827_p13 = scmp.lt.s32.totalorder %s821_s1, %s821_s1 }
  0x21   :  { %p828_p0 = por %p827_p13, %p826_p12 }
  0x23   :  { %p829_p1 = pnand %p828_p0, %p822_p11 }
  0x25   :  { %832 = shalt.err (!%p829_p1)
}
  0x26   :  { %s896_s16 = smov 128   ;;  %s897_s17 = smov 8  }
  0x27   :  { %27 = dma.hbm_to_vmem [thread:$0]  %s1284_s2, 4096, %s22_s8, [#allocation7], %s896_s16, %s896_s16, %s897_s17  }
  0x28   :  { %873 = dma.done.wait [#allocation7], 4096  }
  0x29   :  { %874 = vsyncadd [#allocation7], 4294963200  ;;  %v31_v0 = vlaneseq  ;;  %s34_s20 = sld [smem:[#allocation4]]   ;;  %s964_s21 = sld [smem:[#allocation4 + $0x1]]  ;;  %v898_v1 = vmov 0.0  }
  0x2a   :  { %37 = vst [vmem:[#allocation2] sm:$0xff] %v898_v1  ;;  %38 = vst [vmem:[#allocation2 + $0x8] sm:$0xff] %v898_v1 }
  0x2b   :  { %v968_v2 = vand.u32 127, %v31_v0 }
  0x2f   :  { %p536_p2 = scmp.ge.s32.totalorder %s34_s20, %s964_s21 }
  0x30   :  { %p971_p3 = pmov (!%p536_p2), 1  }
  0x31   :  { %538 = sbr.rel (%p536_p2) target bundleno = 158 (0x9e), region = 48 }
  0x38 LB: > { %s988_s24 = smul.u32 11, %s883_s20  ;;  %s883_s20 = sphi %s34_s20, %s42_s20   ;;  %p879_p3 = pphi %p971_p3, %p1313_p3  }
  0x3a   : > { %s991_s25 = sld [smem:[#allocation5 + %s988_s24]]  ;;  %s51_s26 = sadd.s32 1, %s988_s24 }
  0x3b   : > { %s994_s27 = sld [smem:[#allocation5 + %s51_s26]]  ;;  %s53_s28 = sadd.s32 2, %s988_s24 }
  0x3c   : > { %s997_s29 = sld [smem:[#allocation5 + %s53_s28]] }
  0x40   : > { %p55_p4 = scmp.ge.s32.totalorder %s991_s25, 0  ;;  %p56_p5 = scmp.lt.s32.totalorder %s991_s25, 4 }
  0x41   : > { %p59_p6 = scmp.ge.s32.totalorder %s994_s27, 0  ;;  %p60_p7 = scmp.lt.s32.totalorder %s994_s27, 4 }
  0x42   : > { %p48_p8 = scmp.ne.s32.totalorder %s991_s25, 4294967295  ;;  %p57_p9 = pnand %p56_p5, %p55_p4 }
  0x43   : > { %p61_p10 = pnand %p60_p7, %p59_p6  ;;  %p65_p0 = scmp.gt.s32.totalorder %s997_s29, 0 }
  0x44   : > { %p58_p11 = pneg %p57_p9  ;;  %p1006_p3 = pnand %p879_p3, %p48_p8 }
  0x45   : > { %p62_p12 = pneg %p61_p10 }
  0x46   : > { %p50_p2 = pneg %p1006_p3  }
  0x47   : > { %p63_p13 = pnand %p62_p12, %p58_p11 }
  0x49   : > { %p64_p1 = pneg %p63_p13 }
  0x4b   : > { %p66_p4 = pnand %p65_p0, %p64_p1 }
  0x4d   : > { %p67_p5 = pneg %p66_p4 }
  0x4f   : > { %p68_p6 = pnand %p67_p5, %p50_p2 }
  0x50   : > { %s169_s4 = scvt.s32.f32 (!%p68_p6), %s997_s29  ;;  %s74_s0 = sadd.s32 (!%p68_p6), 3, %s988_s24  ;;  %v899_v19 = vmov (!%p68_p6), 0.0  }
  0x51   : > { %71 = sbr.rel (%p68_p6) target bundleno = 148 (0x94), region = 20  ;;  %s85_s5 = sadd.s32 (!%p68_p6), 4, %s988_s24 }
  0x52   : > { %v170_v3 = vstv (!%p68_p6), %s169_s4  ;;  %s75_s7 = sld [smem:[#allocation5 + %s74_s0]] (!%p68_p6)  ;;  %p89_p7 = scmp.gt.s32.totalorder (!%p68_p6), %s997_s29, 1 }
  0x53   : > { %787 = vrcp.f32 (!%p68_p6), %v170_v3  ;;  %s86_s8 = sld [smem:[#allocation5 + %s85_s5]] (!%p68_p6)  ;;  %s97_s9 = sadd.s32 (!%p68_p6), 5, %s988_s24 }
  0x54   : > { %p101_p8 = scmp.gt.s32.totalorder (!%p68_p6), %s997_s29, 2  ;;  %s98_s11 = sld [smem:[#allocation5 + %s97_s9]] (!%p68_p6) }
  0x55   : > { %s109_s12 = sadd.s32 (!%p68_p6), 6, %s988_s24  ;;  %p113_p9 = scmp.gt.s32.totalorder (!%p68_p6), %s997_s29, 3 }
  0x56   : > { %s110_s14 = sld [smem:[#allocation5 + %s109_s12]] (!%p68_p6)  ;;  %s121_s15 = sadd.s32 (!%p68_p6), 7, %s988_s24 }
  0x57   : > { %p125_p10 = scmp.gt.s32.totalorder (!%p68_p6), %s997_s29, 4  ;;  %s122_s18 = sld [smem:[#allocation5 + %s121_s15]] (!%p68_p6) }
  0x58   : > { %s78_s6 = scalar_select %p65_p0, 1, 0  ;;  %v76_v5 = vstv %s75_s7 }
  0x59   : > { %s90_s10 = scalar_select %p89_p7, 1, 0  ;;  %v87_v7 = vstv %s86_s8  ;;  %vm1030_vm0 = vcmp.eq.s32.totalorder %v968_v2, %v76_v5 }
  0x5a   : > { %s102_s13 = scalar_select %p101_p8, 1, 0  ;;  %v79_v6 = vstv %s78_s6  ;;  %vm1040_vm2 = vcmp.eq.s32.totalorder %v968_v2, %v87_v7  ;;  %v99_v13 = vstv %s98_s11 }
  0x5b   : > { %v91_v8 = vstv %s90_s10  ;;  %vm1034_vm1 = vcmp.eq.s32.totalorder %v79_v6, 1  ;;  %s114_s1 = scalar_select %p113_p9, 1, 0  ;;  %vm1058_vm6 = vcmp.eq.s32.totalorder %v968_v2, %v99_v13 }
  0x5c   : > { %vm1044_vm3 = vcmp.eq.s32.totalorder %v91_v8, 1  ;;  %v103_v14 = vstv %s102_s13  ;;  %vm81_vm4 = vmand %vm1030_vm0, %vm1034_vm1  ;;  %s133_s19 = sadd.s32 8, %s988_s24  ;;  %p137_p11 = scmp.gt.s32.totalorder %s997_s29, 5  ;;  %v111_v17 = vstv %s110_s14 }
  0x5d   : > { %v788_v4 = vpop.eup %787  ;;  %vm93_vm5 = vmand %vm1040_vm2, %vm1044_vm3  ;;  %s126_s22 = scalar_select %p125_p10, 1, 0  ;;  %vm1062_vm7 = vcmp.eq.s32.totalorder %v103_v14, 1  ;;  %v115_v18 = vstv %s114_s1  ;;  %v553_v20 = vsel %vm81_vm4, 1.0, %v899_v19  ;;  %vm1074_vm9 = vcmp.eq.s32.totalorder %v968_v2, %v111_v17 }
  0x5e   : > { %742 = vpush %v788_v4  ;;  %s134_s23 = sld [smem:[#allocation5 + %s133_s19]]  ;;  %v554_v21 = vsel %vm93_vm5, 1.0, %v899_v19  ;;  %s145_s2 = sadd.s32 9, %s988_s24  ;;  %vm105_vm8 = vmand %vm1058_vm6, %vm1062_vm7  ;;  %vm1078_vm10 = vcmp.eq.s32.totalorder %v115_v18, 1  ;;  %v123_v25 = vstv %s122_s18 }
  0x5f   : > { %p149_p12 = scmp.gt.s32.totalorder %s997_s29, 6  ;;  %v96_v24 = vadd.f32 %v554_v21, %v553_v20  ;;  %v127_v26 = vstv %s126_s22  ;;  %s146_s28 = sld [smem:[#allocation5 + %s145_s2]]  ;;  %v555_v27 = vsel %vm105_vm8, 1.0, %v899_v19  ;;  %vm117_vm11 = vmand %vm1074_vm9, %vm1078_vm10  ;;  %vm1088_vm12 = vcmp.eq.s32.totalorder %v968_v2, %v123_v25 }
  0x60   : > { %s138_s26 = scalar_select %p137_p11, 1, 0  ;;  %vm1092_vm13 = vcmp.eq.s32.totalorder %v127_v26, 1  ;;  %v556_v33 = vsel %vm117_vm11, 1.0, %v899_v19 }
  0x61   : > { %s157_s4 = sadd.s32 10, %s988_s24  ;;  %v108_v30 = vadd.f32 %v555_v27, %v96_v24  ;;  %p161_p13 = scmp.gt.s32.totalorder %s997_s29, 7  ;;  %vm129_vm14 = vmand %vm1088_vm12, %vm1092_vm13 }
  0x62   : > { %s150_s0 = scalar_select %p149_p12, 1, 0  ;;  %v139_v32 = vstv %s138_s26  ;;  %v557_v37 = vsel %vm129_vm14, 1.0, %v899_v19 }
  0x63   : > { %s158_s5 = sld [smem:[#allocation5 + %s157_s4]]  ;;  %vm140_vm0 = vcmp.eq.s32.totalorder %v139_v32, 1  ;;  %v120_v34 = vadd.f32 %v556_v33, %v108_v30  ;;  %s552_s29 = sshll.u32 %s991_s25, 2 }
  0x64   : > { %v135_v31 = vstv %s134_s23  ;;  %v151_v36 = vstv %s150_s0  ;;  %s162_s24 = scalar_select %p161_p13, 1, 0 }
  0x65   : > { %vm136_vm15 = vcmp.eq.s32.totalorder %v968_v2, %v135_v31  ;;  %v147_v35 = vstv %s146_s28  ;;  %vm152_vm3 = vcmp.eq.s32.totalorder %v151_v36, 1  ;;  %v132_v38 = vadd.f32 %v557_v37, %v120_v34  ;;  %s73_s6 = sadd.s32 %s552_s29, %s994_s27 }
  0x66   : > { %vm141_vm1 = vmand %vm136_vm15, %vm140_vm0  ;;  %vm148_vm2 = vcmp.eq.s32.totalorder %v968_v2, %v147_v35  ;;  %v163_v40 = vstv %s162_s24  ;;  %s175_s8 = scalar_lea.vmem [#allocation2], %s73_s6 }
  0x67   : > { %v558_v41 = vsel %vm141_vm1, 1.0, %v899_v19  ;;  %vm153_vm4 = vmand %vm148_vm2, %vm152_vm3  ;;  %vm164_vm6 = vcmp.eq.s32.totalorder %v163_v40, 1 }
  0x68   : > { %v144_v42 = vadd.f32 %v558_v41, %v132_v38  ;;  %v559_v43 = vsel %vm153_vm4, 1.0, %v899_v19 }
  0x69   : > { %v159_v39 = vstv %s158_s5 }
  0x6a   : > { %vm160_vm5 = vcmp.eq.s32.totalorder %v968_v2, %v159_v39  ;;  %v156_v44 = vadd.f32 %v559_v43, %v144_v42 }
  0x6b   : > { %vm165_vm7 = vmand %vm160_vm5, %vm164_vm6 }
  0x6c   : > { %v560_v45 = vsel %vm165_vm7, 1.0, %v899_v19 }
  0x6d   : > { %v168_v46 = vadd.f32 %v560_v45, %v156_v44 }
  0x8f   : > { %s743_s7 = spop %742 }
  0x90   : > { %v173_v47 = vstv %s743_s7 }
  0x91   : > { %v174_v48 = vmul.f32 %v173_v47, %v168_v46 }
  0x93   : > { %176 = vst [vmem:[%s175_s8] sm:$0x1] %v174_v48 }
  0x94 PF: > { %s42_s20 = sadd.s32 1, %s883_s20   ;;  %p1313_p3 = pmov %p50_p2 }
  0x95   : > { %p41_p0 = scmp.ge.s32.totalorder %s42_s20, %s964_s21 }
  0x97   :  { %44 = sbr.rel (!%p41_p0) target bundleno = 56 (0x38), region = 54 }
  0x9e PF:  { %v179_v49 = vld [vmem:[#allocation6] sm:$0xff]  ;;  %v180_v50 = vld [vmem:[#allocation6 + $0x8] sm:$0xff]  ;;  %v181_v51 = vld [vmem:[#allocation6 + $0x10] sm:$0xff]  ;;  %s561_s20 = sld [smem:[#allocation4 + $0x1]]   ;;  %s1119_s21 = sld [smem:[#allocation4 + $0x2]] }
  0x9f   :  { %v678_v52 = vpack.c.bf16 %v180_v50, %v179_v49  ;;  %v182_v53 = vld [vmem:[#allocation6 + $0x18] sm:$0xff]  ;;  %v183_v55 = vld [vmem:[#allocation6 + $0x20] sm:$0xff]  ;;  %v184_v56 = vld [vmem:[#allocation6 + $0x28] sm:$0xff] }
  0xa0   :  { %v682_v54 = vpack.c.bf16 %v182_v53, %v181_v51  ;;  %v686_v57 = vpack.c.bf16 %v184_v56, %v183_v55  ;;  %v177_v58 = vld [vmem:[#allocation2] sm:$0xff]  ;;  %v178_v59 = vld [vmem:[#allocation2 + $0x8] sm:$0xff]  ;;  %v187_v63 = vld [vmem:[#allocation6 + $0x40] sm:$0xff] }
  0xa1   :  { %679 = vmatprep.subr.bf16.mxu0 %v678_v52  ;;  %v185_v60 = vld [vmem:[#allocation6 + $0x30] sm:$0xff]  ;;  %v186_v61 = vld [vmem:[#allocation6 + $0x38] sm:$0xff]  ;;  %640 = vmatprep.mubr.f32.mxu0 %v177_v58  ;;  %275 = vst [vmem:[#allocation2] sm:$0xff] %v898_v1  ;;  %276 = vst [vmem:[#allocation2 + $0x8] sm:$0xff] %v898_v1 }
  0xa2   :  { %681 = vmatpush3.bf16.msra.mxu0 %v678_v52  ;;  %v690_v62 = vpack.c.bf16 %v186_v61, %v185_v60  ;;  %v188_v0 = vld [vmem:[#allocation6 + $0x48] sm:$0xff]  ;;  %v189_v4 = vld [vmem:[#allocation6 + $0x50] sm:$0xff]  ;;  %v190_v5 = vld [vmem:[#allocation6 + $0x58] sm:$0xff] }
  0xa3   :  { %683 = vmatprep.subr.bf16.mxu0 %v682_v54  ;;  %v694_v3 = vpack.c.bf16 %v188_v0, %v187_v63  ;;  %v698_v6 = vpack.c.bf16 %v190_v5, %v189_v4  ;;  %v191_v7 = vld [vmem:[#allocation6 + $0x60] sm:$0xff]  ;;  %v192_v8 = vld [vmem:[#allocation6 + $0x68] sm:$0xff]  ;;  %v193_v10 = vld [vmem:[#allocation6 + $0x70] sm:$0xff] }
  0xa4   :  { %v702_v9 = vpack.c.bf16 %v192_v8, %v191_v7  ;;  %v194_v1 = vld [vmem:[#allocation6 + $0x78] sm:$0xff]  ;;  %p544_p3 = scmp.ge.s32.totalorder %s561_s20, %s1119_s21 }
  0xa5   :  { %v706_v11 = vpack.c.bf16 %v194_v1, %v193_v10  ;;  %p1122_p1 = pmov (!%p544_p3), 1  }
  0xa6   :  { %685 = vmatpush3.bf16.msra.mxu0 %v682_v54 }
  0xa7   :  { %687 = vmatprep.subr.bf16.mxu0 %v686_v57 }
  0xaa   :  { %689 = vmatpush3.bf16.msra.mxu0 %v686_v57 }
  0xab   :  { %691 = vmatprep.subr.bf16.mxu0 %v690_v62 }
  0xae   :  { %693 = vmatpush3.bf16.msra.mxu0 %v690_v62 }
  0xaf   :  { %695 = vmatprep.subr.bf16.mxu0 %v694_v3 }
  0xb2   :  { %697 = vmatpush3.bf16.msra.mxu0 %v694_v3 }
  0xb3   :  { %699 = vmatprep.subr.bf16.mxu0 %v698_v6 }
  0xb6   :  { %701 = vmatpush3.bf16.msra.mxu0 %v698_v6 }
  0xb7   :  { %703 = vmatprep.subr.bf16.mxu0 %v702_v9 }
  0xba   :  { %705 = vmatpush3.bf16.msra.mxu0 %v702_v9 }
  0xbb   :  { %707 = vmatprep.subr.bf16.mxu0 %v706_v11 }
  0xbe   :  { %709 = vmatpush3.bf16.msra.mxu0 %v706_v11 }
  0xc1   :  { %641 = vmatmul.mubr.f32.vlgmr.msra.gmra.mrb[0].mxu0 %v178_v59 }
 0x190   :  { %546 = sbr.rel (%p544_p3) target bundleno = 509 (0x1fd), region = 59 }
 0x194   :  { %v642_v12 = vpop.f32.mrb[0].mxu0 }
 0x195   :  { %271 = vst [vmem:[#allocation9 + $0x8] sm:$0xff] %v642_v12  ;;  %v261_v13 = vpop.f32.mrb[1].mxu0 }
 0x196   :  { %270 = vst [vmem:[#allocation9] sm:$0xff] %v261_v13 }
 0x197 LB: > { %s1139_s10 = smul.u32 11, %s891_s20  ;;  %s891_s20 = sphi %s561_s20, %s280_s20   ;;  %p887_p1 = pphi %p1122_p1, %p1340_p1  }
 0x199   : > { %s1142_s11 = sld [smem:[#allocation5 + %s1139_s10]]  ;;  %s289_s12 = sadd.s32 1, %s1139_s10 }
 0x19a   : > { %s1145_s13 = sld [smem:[#allocation5 + %s289_s12]]  ;;  %s291_s14 = sadd.s32 2, %s1139_s10 }
 0x19b   : > { %s1148_s15 = sld [smem:[#allocation5 + %s291_s14]] }
 0x19f   : > { %p293_p2 = scmp.ge.s32.totalorder %s1142_s11, 0  ;;  %p294_p4 = scmp.lt.s32.totalorder %s1142_s11, 4 }
 0x1a0   : > { %p297_p5 = scmp.ge.s32.totalorder %s1145_s13, 0  ;;  %p298_p6 = scmp.lt.s32.totalorder %s1145_s13, 4 }
 0x1a1   : > { %p286_p7 = scmp.ne.s32.totalorder %s1142_s11, 4294967295  ;;  %p295_p8 = pnand %p294_p4, %p293_p2 }
 0x1a2   : > { %p299_p9 = pnand %p298_p6, %p297_p5  ;;  %p303_p13 = scmp.gt.s32.totalorder %s1148_s15, 0 }
 0x1a3   : > { %p296_p10 = pneg %p295_p8  ;;  %p1157_p1 = pnand %p887_p1, %p286_p7 }
 0x1a4   : > { %p300_p11 = pneg %p299_p9 }
 0x1a5   : > { %p288_p3 = pneg %p1157_p1  }
 0x1a6   : > { %p301_p12 = pnand %p300_p11, %p296_p10 }
 0x1a8   : > { %p302_p0 = pneg %p301_p12 }
 0x1aa   : > { %p304_p2 = pnand %p303_p13, %p302_p0 }
 0x1ac   : > { %p305_p4 = pneg %p304_p2 }
 0x1ae   : > { %p306_p5 = pnand %p305_p4, %p288_p3 }
 0x1af   : > { %s407_s18 = scvt.s32.f32 (!%p306_p5), %s1148_s15  ;;  %s312_s19 = sadd.s32 (!%p306_p5), 3, %s1139_s10  ;;  %v900_v30 = vmov (!%p306_p5), 0.0  }
 0x1b0   : > { %309 = sbr.rel (%p306_p5) target bundleno = 499 (0x1f3), region = 31  ;;  %s323_s22 = sadd.s32 (!%p306_p5), 4, %s1139_s10 }
 0x1b1   : > { %v408_v14 = vstv (!%p306_p5), %s407_s18  ;;  %s313_s2 = sld [smem:[#allocation5 + %s312_s19]] (!%p306_p5)  ;;  %p327_p6 = scmp.gt.s32.totalorder (!%p306_p5), %s1148_s15, 1 }
 0x1b2   : > { %789 = vrcp.f32 (!%p306_p5), %v408_v14  ;;  %s324_s26 = sld [smem:[#allocation5 + %s323_s22]] (!%p306_p5)  ;;  %s335_s28 = sadd.s32 (!%p306_p5), 5, %s1139_s10 }
 0x1b3   : > { %p339_p7 = scmp.gt.s32.totalorder (!%p306_p5), %s1148_s15, 2  ;;  %s336_s0 = sld [smem:[#allocation5 + %s335_s28]] (!%p306_p5) }
 0x1b4   : > { %s347_s5 = sadd.s32 (!%p306_p5), 6, %s1139_s10  ;;  %p351_p8 = scmp.gt.s32.totalorder (!%p306_p5), %s1148_s15, 3 }
 0x1b5   : > { %s348_s29 = sld [smem:[#allocation5 + %s347_s5]] (!%p306_p5)  ;;  %s359_s6 = sadd.s32 (!%p306_p5), 7, %s1139_s10 }
 0x1b6   : > { %p363_p9 = scmp.gt.s32.totalorder (!%p306_p5), %s1148_s15, 4  ;;  %s360_s8 = sld [smem:[#allocation5 + %s359_s6]] (!%p306_p5) }
 0x1b7   : > { %s316_s23 = scalar_select %p303_p13, 1, 0  ;;  %v314_v16 = vstv %s313_s2 }
 0x1b8   : > { %s328_s4 = scalar_select %p327_p6, 1, 0  ;;  %v325_v18 = vstv %s324_s26  ;;  %vm1181_vm8 = vcmp.eq.s32.totalorder %v968_v2, %v314_v16 }
 0x1b9   : > { %s340_s24 = scalar_select %p339_p7, 1, 0  ;;  %v317_v17 = vstv %s316_s23  ;;  %vm1191_vm10 = vcmp.eq.s32.totalorder %v968_v2, %v325_v18  ;;  %v337_v24 = vstv %s336_s0 }
 0x1ba   : > { %v329_v19 = vstv %s328_s4  ;;  %vm1185_vm9 = vcmp.eq.s32.totalorder %v317_v17, 1  ;;  %s352_s7 = scalar_select %p351_p8, 1, 0  ;;  %vm1209_vm14 = vcmp.eq.s32.totalorder %v968_v2, %v337_v24 }
 0x1bb   : > { %vm1195_vm11 = vcmp.eq.s32.totalorder %v329_v19, 1  ;;  %v341_v25 = vstv %s340_s24  ;;  %vm319_vm12 = vmand %vm1181_vm8, %vm1185_vm9  ;;  %s371_s9 = sadd.s32 8, %s1139_s10  ;;  %p375_p10 = scmp.gt.s32.totalorder %s1148_s15, 5  ;;  %v349_v28 = vstv %s348_s29 }
 0x1bc   : > { %v790_v15 = vpop.eup %789  ;;  %vm331_vm13 = vmand %vm1191_vm10, %vm1195_vm11  ;;  %s364_s25 = scalar_select %p363_p9, 1, 0  ;;  %vm1213_vm15 = vcmp.eq.s32.totalorder %v341_v25, 1  ;;  %v353_v29 = vstv %s352_s7  ;;  %v564_v31 = vsel %vm319_vm12, 1.0, %v900_v30  ;;  %vm1225_vm1 = vcmp.eq.s32.totalorder %v968_v2, %v349_v28 }
 0x1bd   : > { %744 = vpush %v790_v15  ;;  %s372_s27 = sld [smem:[#allocation5 + %s371_s9]]  ;;  %v565_v32 = vsel %vm331_vm13, 1.0, %v900_v30  ;;  %s383_s30 = sadd.s32 9, %s1139_s10  ;;  %vm343_vm0 = vmand %vm1209_vm14, %vm1213_vm15  ;;  %vm1229_vm2 = vcmp.eq.s32.totalorder %v353_v29, 1  ;;  %v361_v36 = vstv %s360_s8 }
 0x1be   : > { %p387_p11 = scmp.gt.s32.totalorder %s1148_s15, 6  ;;  %v334_v35 = vadd.f32 %v565_v32, %v564_v31  ;;  %v365_v37 = vstv %s364_s25  ;;  %s384_s14 = sld [smem:[#allocation5 + %s383_s30]]  ;;  %v566_v38 = vsel %vm343_vm0, 1.0, %v900_v30  ;;  %vm355_vm3 = vmand %vm1225_vm1, %vm1229_vm2  ;;  %vm1239_vm4 = vcmp.eq.s32.totalorder %v968_v2, %v361_v36 }
 0x1bf   : > { %s376_s12 = scalar_select %p375_p10, 1, 0  ;;  %vm1243_vm5 = vcmp.eq.s32.totalorder %v365_v37, 1  ;;  %v567_v44 = vsel %vm355_vm3, 1.0, %v900_v30 }
 0x1c0   : > { %s395_s18 = sadd.s32 10, %s1139_s10  ;;  %v346_v41 = vadd.f32 %v566_v38, %v334_v35  ;;  %p399_p12 = scmp.gt.s32.totalorder %s1148_s15, 7  ;;  %vm367_vm6 = vmand %vm1239_vm4, %vm1243_vm5 }
 0x1c1   : > { %s388_s19 = scalar_select %p387_p11, 1, 0  ;;  %v377_v43 = vstv %s376_s12  ;;  %v568_v48 = vsel %vm367_vm6, 1.0, %v900_v30 }
 0x1c2   : > { %s396_s22 = sld [smem:[#allocation5 + %s395_s18]]  ;;  %vm378_vm8 = vcmp.eq.s32.totalorder %v377_v43, 1  ;;  %v358_v45 = vadd.f32 %v567_v44, %v346_v41  ;;  %s563_s15 = sshll.u32 %s1142_s11, 2 }
 0x1c3   : > { %v373_v42 = vstv %s372_s27  ;;  %v389_v47 = vstv %s388_s19  ;;  %s400_s10 = scalar_select %p399_p12, 1, 0 }
 0x1c4   : > { %vm374_vm7 = vcmp.eq.s32.totalorder %v968_v2, %v373_v42  ;;  %v385_v46 = vstv %s384_s14  ;;  %vm390_vm11 = vcmp.eq.s32.totalorder %v389_v47, 1  ;;  %v370_v49 = vadd.f32 %v568_v48, %v358_v45  ;;  %s311_s23 = sadd.s32 %s563_s15, %s1145_s13 }
 0x1c5   : > { %vm379_vm9 = vmand %vm374_vm7, %vm378_vm8  ;;  %vm386_vm10 = vcmp.eq.s32.totalorder %v968_v2, %v385_v46  ;;  %v401_v51 = vstv %s400_s10  ;;  %s413_s26 = scalar_lea.vmem [#allocation2], %s311_s23 }
 0x1c6   : > { %v569_v52 = vsel %vm379_vm9, 1.0, %v900_v30  ;;  %vm391_vm12 = vmand %vm386_vm10, %vm390_vm11  ;;  %vm402_vm14 = vcmp.eq.s32.totalorder %v401_v51, 1 }
 0x1c7   : > { %v382_v53 = vadd.f32 %v569_v52, %v370_v49  ;;  %v570_v54 = vsel %vm391_vm12, 1.0, %v900_v30 }
 0x1c8   : > { %v397_v50 = vstv %s396_s22 }
 0x1c9   : > { %vm398_vm13 = vcmp.eq.s32.totalorder %v968_v2, %v397_v50  ;;  %v394_v55 = vadd.f32 %v570_v54, %v382_v53 }
 0x1ca   : > { %vm403_vm15 = vmand %vm398_vm13, %vm402_vm14 }
 0x1cb   : > { %v571_v56 = vsel %vm403_vm15, 1.0, %v900_v30 }
 0x1cc   : > { %v406_v57 = vadd.f32 %v571_v56, %v394_v55 }
 0x1ee   : > { %s745_s2 = spop %744 }
 0x1ef   : > { %v411_v58 = vstv %s745_s2 }
 0x1f0   : > { %v412_v59 = vmul.f32 %v411_v58, %v406_v57 }
 0x1f2   : > { %414 = vst [vmem:[%s413_s26] sm:$0x1] %v412_v59 }
 0x1f3 PF: > { %s280_s20 = sadd.s32 1, %s891_s20   ;;  %p1340_p1 = pmov %p288_p3 }
 0x1f4   : > { %p279_p13 = scmp.ge.s32.totalorder %s280_s20, %s1119_s21 }
 0x1f6   :  { %282 = sbr.rel (!%p279_p13) target bundleno = 407 (0x197), region = 65 }
 0x1fd PF:  { %v418_v60 = vld [vmem:[#allocation6 + $0x80] sm:$0xff]  ;;  %v419_v61 = vld [vmem:[#allocation6 + $0x88] sm:$0xff]  ;;  %v420_v62 = vld [vmem:[#allocation6 + $0x90] sm:$0xff]  ;;  %s901_s20 = smov [#allocation9]  }
 0x1fe   :  { %v710_v63 = vpack.c.bf16 %v419_v61, %v418_v60  ;;  %v421_v0 = vld [vmem:[#allocation6 + $0x98] sm:$0xff]  ;;  %v422_v4 = vld [vmem:[#allocation6 + $0xa0] sm:$0xff]  ;;  %v423_v5 = vld [vmem:[#allocation6 + $0xa8] sm:$0xff]  ;;  %s517_s21 = sshll.u32 %s901_s20, 4  ;;  %s518_s21 = int_to_ptr.vmem [resolvable:$true] %s517_s21 }
 0x1ff   :  { %v714_v3 = vpack.c.bf16 %v421_v0, %v420_v62  ;;  %v718_v6 = vpack.c.bf16 %v423_v5, %v422_v4  ;;  %v415_v7 = vld [vmem:[#allocation2] sm:$0xff]  ;;  %v425_v9 = vld [vmem:[#allocation6 + $0xb8] sm:$0xff]  ;;  %v426_v2 = vld [vmem:[#allocation6 + $0xc0] sm:$0xff]  ;;  %s833_s11 = scalar_lea.vmem %s518_s21, 512  ;;  %p838_p0 = scmp.lt.s32.totalorder %s518_s21, %s518_s21 }
 0x200   :  { %711 = vmatprep.subr.bf16.mxu1 %v710_v63  ;;  %v424_v8 = vld [vmem:[#allocation6 + $0xb0] sm:$0xff]  ;;  %675 = vmatprep.mubr.f32.mxu1 %v415_v7  ;;  %v427_v1 = vld [vmem:[#allocation6 + $0xc8] sm:$0xff]  ;;  %v429_v13 = vld [vmem:[#allocation6 + $0xd8] sm:$0xff]  ;;  %p834_p1 = scmp.ne.s32.totalorder %s518_s21, %s833_s11  ;;  %p839_p3 = scmp.lt.s32.totalorder %s833_s11, %s833_s11 }
 0x201   :  { %713 = vmatpush3.bf16.msra.mxu1 %v710_v63  ;;  %v722_v10 = vpack.c.bf16 %v425_v9, %v424_v8  ;;  %v726_v11 = vpack.c.bf16 %v427_v1, %v426_v2  ;;  %v428_v12 = vld [vmem:[#allocation6 + $0xd0] sm:$0xff]  ;;  %v430_v15 = vld [vmem:[#allocation6 + $0xe0] sm:$0xff]  ;;  %v431_v16 = vld [vmem:[#allocation6 + $0xe8] sm:$0xff] }
 0x202   :  { %715 = vmatprep.subr.bf16.mxu1 %v714_v3  ;;  %v730_v14 = vpack.c.bf16 %v429_v13, %v428_v12  ;;  %v734_v17 = vpack.c.bf16 %v431_v16, %v430_v15  ;;  %v432_v18 = vld [vmem:[#allocation6 + $0xf0] sm:$0xff]  ;;  %v433_v19 = vld [vmem:[#allocation6 + $0xf8] sm:$0xff]  ;;  %p840_p2 = por %p839_p3, %p838_p0 }
 0x203   :  { %v738_v20 = vpack.c.bf16 %v433_v19, %v432_v18  ;;  %v416_v21 = vld [vmem:[#allocation2 + $0x8] sm:$0xff] }
 0x204   :  { %p841_p4 = pnand %p840_p2, %p834_p1 }
 0x205   :  { %717 = vmatpush3.bf16.msra.mxu1 %v714_v3 }
 0x206   :  { %719 = vmatprep.subr.bf16.mxu1 %v718_v6 }
 0x209   :  { %721 = vmatpush3.bf16.msra.mxu1 %v718_v6 }
 0x20a   :  { %723 = vmatprep.subr.bf16.mxu1 %v722_v10 }
 0x20d   :  { %725 = vmatpush3.bf16.msra.mxu1 %v722_v10 }
 0x20e   :  { %727 = vmatprep.subr.bf16.mxu1 %v726_v11 }
 0x211   :  { %729 = vmatpush3.bf16.msra.mxu1 %v726_v11 }
 0x212   :  { %731 = vmatprep.subr.bf16.mxu1 %v730_v14 }
 0x215   :  { %733 = vmatpush3.bf16.msra.mxu1 %v730_v14 }
 0x216   :  { %735 = vmatprep.subr.bf16.mxu1 %v734_v17 }
 0x219   :  { %737 = vmatpush3.bf16.msra.mxu1 %v734_v17 }
 0x21a   :  { %739 = vmatprep.subr.bf16.mxu1 %v738_v20 }
 0x21d   :  { %741 = vmatpush3.bf16.msra.mxu1 %v738_v20 }
 0x220   :  { %676 = vmatmul.mubr.f32.vlgmr.msra.gmra.mrb[0].mxu1 %v416_v21 }
 0x2f3   :  { %v677_v22 = vpop.f32.mrb[0].mxu1 }
 0x2f4   :  { %511 = vst [vmem:[#allocation9 + $0x18] sm:$0xff] %v677_v22  ;;  %v500_v23 = vpop.f32.mrb[1].mxu1 }
 0x2f5   :  { %510 = vst [vmem:[#allocation9 + $0x10] sm:$0xff] %v500_v23 }
 0x2f6   :  { %844 = shalt.err (!%p841_p4)
}
 0x2f7   :  { %s845_s4 = scalar_lea.hbm %s1285_s3, 512 }
 0x2f8   :  { %p846_p5 = scmp.ne.s32.totalorder %s1285_s3, %s845_s4  ;;  %p849_p6 = scmp.lt.u32.totalorder %s845_s4, %s1285_s3 }
 0x2fa   :  { %p851_p7 = pnand %p849_p6, %p846_p5 }
 0x2fc   :  { %854 = shalt.err (!%p851_p7)
}
 0x2fd   :  { %523 = dma.vmem_to_hbm [thread:$0]  %s518_s21, 512, %s1285_s3, [#allocation8], %s896_s16, %s896_s16, %s897_s17  }
 0x2fe   :  { %875 = dma.done.wait [#allocation8], 512  }
 0x2ff   :  { %876 = vsyncadd [#allocation8], 4294966784 }
 0x300   :  { %527 = vsyncpa [#allocation7], 1 }
 0x301   :  { %528 = vsyncpa [#allocation8], 1 }

</bundles_post_ra>
